<compile_context>
chip_gen: v7x
topology: tpu7x:2x2x1
jax: 0.10.0
libtpu: 0.0.40
codegen_flags: <defaults>
</compile_context>

<pallas_src>
import functools

import jax
import jax.numpy as jnp
from jax.experimental import pallas as pl
from jax.experimental.pallas import tpu as pltpu


def _round_up(n, m):
    return ((n + m - 1) // m) * m


def _pick_batch_tile(batch):
    # Small batches: one tile (rounded to a sublane multiple).
    if batch <= 128:
        return max(8, _round_up(batch, 8))
    # Larger batches: 128-row tiles -> >=2 grid steps so a 2-TC chip (v7x)
    # can shard the parallel batch axis, and per-step VMEM stays small
    # enough for v5e's 16 MiB scoped-VMEM default.
    return 128


def _laplace_vae_kernel(x_ref, eps_ref, w_in_ref, w_hid_ref, b_ref, out_ref, *,
                        ip, lp, hp, i2p):
    """One batch tile of the full VAE forward.

    ip  = round_up(input_dim, 8)     (x / w1-row width)
    lp  = round_up(latent_dim, 128)  (per-latent-head padded width)
    hp  = round_up(hidden_dim, 128)  (padded hidden width)
    i2p = round_up(2*input_dim, 128) (fused [loc|log_scale] padded width)
    """
    bf16 = jnp.bfloat16
    f32 = jnp.float32

    x = x_ref[...]          # (tm, ip)  f32, zero-padded cols
    eps = eps_ref[...]      # (tm, lp)  f32, zero-padded cols

    # ---- aligned static views of the packed bf16 weights ----
    w1 = w_in_ref[0:ip, :]                                   # (ip, hp) encoder[0]
    wd1 = w_in_ref[ip:ip + lp, :]                            # (lp, hp) decoder[0]

    w2 = w_hid_ref[:, 0:hp]                                  # (hp, hp) encoder[2]
    w_lat = w_hid_ref[:, hp:hp + 2 * lp]                     # (hp, 2lp) [mu|pad|logvar|pad]
    wd2 = w_hid_ref[:, hp + 2 * lp:2 * hp + 2 * lp]          # (hp, hp) decoder[2]
    w_out = w_hid_ref[:, 2 * hp + 2 * lp:2 * hp + 2 * lp + i2p]  # (hp, i2p) [loc|log_scale|pad]

    # ---- biases: one sublane row each, lane offset 0 (aligned views) ----
    b1 = b_ref[0:1, 0:hp]
    b2 = b_ref[1:2, 0:hp]
    b_lat = b_ref[2:3, 0:2 * lp]
    bd1 = b_ref[3:4, 0:hp]
    bd2 = b_ref[4:5, 0:hp]
    b_out = b_ref[5:6, 0:i2p]

    # ---- encoder: Linear -> ReLU -> Linear -> ReLU (bf16 MXU, f32 epilogue) ----
    h = jnp.dot(x.astype(bf16), w1, preferred_element_type=f32) + b1
    h = jnp.maximum(h, 0.0)
    h = jnp.dot(h.astype(bf16), w2, preferred_element_type=f32) + b2
    h = jnp.maximum(h, 0.0)

    # ---- fused latent heads: one matmul -> [mu|pad | logvar|pad] ----
    lat = jnp.dot(h.astype(bf16), w_lat, preferred_element_type=f32) + b_lat  # (tm, 2lp)

    # Store the latents into their 128-aligned output slice right away so the
    # values don't stay live through the decoder matmuls.
    out_ref[:, i2p:i2p + 2 * lp] = lat

    mu = lat[:, 0:lp]            # aligned view (offset 0)
    logvar = lat[:, lp:2 * lp]   # aligned view (offset lp, multiple of 128)

    # ---- reparameterize: z = mu + eps * exp(0.5 * logvar) (f32 VPU/EUP) ----
    # Padded columns: 0 + 0 * exp(0) = 0, so the padded rows of wd1 (zeros)
    # contribute nothing downstream.
    z = mu + eps * jnp.exp(0.5 * logvar)

    # ---- decoder: Linear -> ReLU -> Linear -> ReLU ----
    hd = jnp.dot(z.astype(bf16), wd1, preferred_element_type=f32) + bd1
    hd = jnp.maximum(hd, 0.0)
    hd = jnp.dot(hd.astype(bf16), wd2, preferred_element_type=f32) + bd2
    hd = jnp.maximum(hd, 0.0)

    # ---- fused output heads: one matmul -> [loc | log_scale | pad] ----
    outs = jnp.dot(hd.astype(bf16), w_out, preferred_element_type=f32) + b_out
    out_ref[:, 0:i2p] = outs


def pack_params(params, *, input_dim, latent_dim, hidden_dim):
    """Pack the 16 per-layer arrays into 3 aligned buffers (once, host-side).

    Returns (w_in bf16, w_hid bf16, b_all f32). Every segment boundary is a
    multiple of 128 lanes (columns) / 8 sublanes (rows); padding is zeros so
    padded rows/columns contribute nothing to the matmuls.
    """
    (w1, b1, w2, b2, wmu, bmu, wlv, blv,
     wd1, bd1, wd2, bd2, wloc, bloc, wls, bls) = params
    I, L, H = input_dim, latent_dim, hidden_dim
    ip = _round_up(I, 8)
    lp = _round_up(L, 128)
    hp = _round_up(H, 128)
    i2p = _round_up(2 * I, 128)

    def padw(w, rows, cols):
        out = jnp.zeros((rows, cols), jnp.float32)
        return out.at[:w.shape[0], :w.shape[1]].set(w)

    # w_in: rows [w1 (ip) | wd1 (lp)], cols hp.
    w_in = jnp.concatenate([padw(w1, ip, hp), padw(wd1, lp, hp)], axis=0)

    # w_hid: cols [w2 (hp) | wmu (lp) | wlv (lp) | wd2 (hp) | wloc,wls (i2p)], rows hp.
    w_lat = jnp.concatenate([padw(wmu, hp, lp), padw(wlv, hp, lp)], axis=1)
    w_out = padw(jnp.concatenate([wloc, wls], axis=1), hp, i2p)
    w_hid = jnp.concatenate(
        [padw(w2, hp, hp), w_lat, padw(wd2, hp, hp), w_out], axis=1)

    # biases: rows of an (8, bw) f32 buffer, lane offset 0.
    bw = max(hp, 2 * lp, i2p)
    b_all = jnp.zeros((8, bw), jnp.float32)
    b_all = b_all.at[0, :H].set(b1[0])
    b_all = b_all.at[1, :H].set(b2[0])
    b_all = b_all.at[2, :L].set(bmu[0])
    b_all = b_all.at[2, lp:lp + L].set(blv[0])
    b_all = b_all.at[3, :H].set(bd1[0])
    b_all = b_all.at[4, :H].set(bd2[0])
    b_all = b_all.at[5, :I].set(bloc[0])
    b_all = b_all.at[5, I:2 * I].set(bls[0])

    return (w_in.astype(jnp.bfloat16), w_hid.astype(jnp.bfloat16), b_all)


def laplace_vae_forward(x, eps, packed_params, *, input_dim, latent_dim, hidden_dim):
    """Fused LaplaceVAE forward. Returns (loc, log_scale, mu, logvar)."""
    w_in, w_hid, b_all = packed_params
    B = x.shape[0]
    I, L, H = input_dim, latent_dim, hidden_dim
    ip = _round_up(I, 8)
    lp = _round_up(L, 128)
    hp = _round_up(H, 128)
    i2p = _round_up(2 * I, 128)
    ow = i2p + 2 * lp          # lane-dense output slab width (multiple of 128)

    tm = _pick_batch_tile(B)
    bp = _round_up(B, tm)      # pad the batch instead of shrinking the tile
    grid = (bp // tm,)

    # Host-side zero-padding of the activations (cheap, keeps kernel aligned).
    xp = jnp.zeros((bp, ip), jnp.float32).at[:B, :I].set(x.astype(jnp.float32))
    ep = jnp.zeros((bp, lp), jnp.float32).at[:B, :L].set(eps.astype(jnp.float32))

    kernel = functools.partial(_laplace_vae_kernel, ip=ip, lp=lp, hp=hp, i2p=i2p)

    vmem = pltpu.MemorySpace.VMEM
    in_specs = [
        pl.BlockSpec((tm, ip), lambda i: (i, 0), memory_space=vmem),   # x
        pl.BlockSpec((tm, lp), lambda i: (i, 0), memory_space=vmem),   # eps
        # Packed params: constant block index -> DMA'd once, stay resident.
        pl.BlockSpec(w_in.shape, lambda i: (0, 0), memory_space=vmem),
        pl.BlockSpec(w_hid.shape, lambda i: (0, 0), memory_space=vmem),
        pl.BlockSpec(b_all.shape, lambda i: (0, 0), memory_space=vmem),
    ]
    out_specs = pl.BlockSpec((tm, ow), lambda i: (i, 0), memory_space=vmem)

    # VMEM budget: resident weights (double-buffered by default) + double-
    # buffered activation tiles, with headroom; never below the 32 MiB default.
    weight_bytes = 2 * (w_in.size * 2 + w_hid.size * 2 + b_all.size * 4)
    tile_bytes = 2 * 2 * 4 * tm * (ip + lp + ow)
    vmem_limit = min(max(int(1.5 * (weight_bytes + tile_bytes)) + (2 << 20),
                         32 << 20), 60 << 20)

    flops = 2 * bp * (ip * hp + hp * hp + hp * 2 * lp
                      + lp * hp + hp * hp + hp * i2p)
    bytes_accessed = (xp.size * 4 + ep.size * 4 + w_in.size * 2
                      + w_hid.size * 2 + b_all.size * 4 + bp * ow * 4)
    cost = pl.CostEstimate(flops=flops, transcendentals=bp * lp,
                           bytes_accessed=bytes_accessed)

    out = pl.pallas_call(
        kernel,
        grid=grid,
        in_specs=in_specs,
        out_specs=out_specs,
        out_shape=jax.ShapeDtypeStruct((bp, ow), jnp.float32),
        compiler_params=pltpu.CompilerParams(
            dimension_semantics=("parallel",),
            vmem_limit_bytes=vmem_limit),
        cost_estimate=cost,
    )(xp, ep, w_in, w_hid, b_all)

    loc = out[:B, 0:I]
    log_scale = out[:B, I:2 * I]
    mu = out[:B, i2p:i2p + L]
    logvar = out[:B, i2p + lp:i2p + lp + L]
    return loc, log_scale, mu, logvar


def init_params(key, input_dim, latent_dim, hidden_dim):
    """Deterministic PyTorch-Linear-style init: U(-1/sqrt(fan_in), 1/sqrt(fan_in))."""
    def linear(k, fan_in, fan_out):
        kw, kb = jax.random.split(k)
        bound = 1.0 / (fan_in ** 0.5)
        w = jax.random.uniform(kw, (fan_in, fan_out), jnp.float32, -bound, bound)
        b = jax.random.uniform(kb, (1, fan_out), jnp.float32, -bound, bound)
        return w, b

    keys = jax.random.split(key, 8)
    w1, b1 = linear(keys[0], input_dim, hidden_dim)      # encoder[0]
    w2, b2 = linear(keys[1], hidden_dim, hidden_dim)     # encoder[2]
    wmu, bmu = linear(keys[2], hidden_dim, latent_dim)   # fc_mu
    wlv, blv = linear(keys[3], hidden_dim, latent_dim)   # fc_logvar
    wd1, bd1 = linear(keys[4], latent_dim, hidden_dim)   # decoder[0]
    wd2, bd2 = linear(keys[5], hidden_dim, hidden_dim)   # decoder[2]
    wloc, bloc = linear(keys[6], hidden_dim, input_dim)  # fc_loc
    wls, bls = linear(keys[7], hidden_dim, input_dim)    # fc_log_scale
    return (w1, b1, w2, b2, wmu, bmu, wlv, blv,
            wd1, bd1, wd2, bd2, wloc, bloc, wls, bls)


def _reference_forward(x, eps, params, *, matmul_dtype=jnp.float32):
    """Pure-JAX reference. matmul_dtype=bf16 reproduces the kernel's MXU
    quantization (f32 accumulation) for a tight numerical check."""
    (w1, b1, w2, b2, wmu, bmu, wlv, blv,
     wd1, bd1, wd2, bd2, wloc, bloc, wls, bls) = params

    def mm(a, w):
        return jnp.dot(a.astype(matmul_dtype), w.astype(matmul_dtype),
                       preferred_element_type=jnp.float32)

    h = jnp.maximum(mm(x, w1) + b1, 0.0)
    h = jnp.maximum(mm(h, w2) + b2, 0.0)
    mu = mm(h, wmu) + bmu
    logvar = mm(h, wlv) + blv
    z = mu + eps * jnp.exp(0.5 * logvar)
    hd = jnp.maximum(mm(z, wd1) + bd1, 0.0)
    hd = jnp.maximum(mm(hd, wd2) + bd2, 0.0)
    return mm(hd, wloc) + bloc, mm(hd, wls) + bls, mu, logvar


if __name__ == "__main__":
    B, INPUT_DIM, LATENT_DIM, HIDDEN_DIM = 8, 16, 8, 32

    key = jax.random.PRNGKey(0)
    k_x, k_eps, k_params = jax.random.split(key, 3)

    x = jax.random.normal(k_x, (B, INPUT_DIM), jnp.float32)
    # torch.randn_like noise is generated host-side and fed to the kernel.
    eps = jax.random.normal(k_eps, (B, LATENT_DIM), jnp.float32)
    params = init_params(k_params, INPUT_DIM, LATENT_DIM, HIDDEN_DIM)
    packed = pack_params(params, input_dim=INPUT_DIM, latent_dim=LATENT_DIM,
                         hidden_dim=HIDDEN_DIM)   # pack once, outside the kernel

    loc, log_scale, mu, logvar = laplace_vae_forward(
        x, eps, packed,
        input_dim=INPUT_DIM, latent_dim=LATENT_DIM, hidden_dim=HIDDEN_DIM)
    jax.block_until_ready((loc, log_scale, mu, logvar))

    # Tight check against a bf16-quantized reference (same MXU quantization).
    ref_q = _reference_forward(x, eps, params, matmul_dtype=jnp.bfloat16)
    # Looser semantic check against the full-f32 reference (bf16 weight error).
    ref_f = _reference_forward(x, eps, params, matmul_dtype=jnp.float32)
    for got, want_q, want_f in zip((loc, log_scale, mu, logvar), ref_q, ref_f):
        assert got.shape == want_f.shape and got.dtype == want_f.dtype
        assert jnp.allclose(got, want_q, atol=2e-3, rtol=2e-3)
        assert jnp.allclose(got, want_f, atol=5e-2, rtol=5e-2)

    print("KERNEL_OK")
</pallas_src>

<mosaic_0001>
module attributes {stable_mosaic.version = 11 : i64} {
  func.func @_laplace_vae_kernel(%arg0: i32, %arg1: memref<8x16xf32, #tpu.memory_space<vmem>>, %arg2: memref<8x128xf32, #tpu.memory_space<vmem>>, %arg3: memref<144x128xbf16, #tpu.memory_space<vmem>>, %arg4: memref<128x640xbf16, #tpu.memory_space<vmem>>, %arg5: memref<8x256xf32, #tpu.memory_space<vmem>>, %arg6: memref<8x384xf32, #tpu.memory_space<vmem>>) attributes {dimension_semantics = [#tpu.dimension_semantics<parallel>], iteration_bounds = array<i64: 1>, scalar_prefetch = 0 : i64, scratch_operands = 0 : i64, tpu.core_type = #tpu.core_type<tc>, window_params = [{transform_indices = @transform_0, window_bounds = array<i64: 8, 16>}, {transform_indices = @transform_1, window_bounds = array<i64: 8, 128>}, {pipeline_mode = #tpu.pipeline_mode<synchronous>, transform_indices = @transform_2, window_bounds = array<i64: 144, 128>}, {pipeline_mode = #tpu.pipeline_mode<synchronous>, transform_indices = @transform_3, window_bounds = array<i64: 128, 640>}, {pipeline_mode = #tpu.pipeline_mode<synchronous>, transform_indices = @transform_4, window_bounds = array<i64: 8, 256>}, {transform_indices = @transform_5, window_bounds = array<i64: 8, 384>}]} {
    %c0 = arith.constant 0 : index
    %c0_0 = arith.constant 0 : index
    %0 = vector.load %arg1[%c0, %c0_0] : memref<8x16xf32, #tpu.memory_space<vmem>>, vector<8x16xf32>
    %c0_1 = arith.constant 0 : index
    %c0_2 = arith.constant 0 : index
    %1 = vector.load %arg2[%c0_1, %c0_2] : memref<8x128xf32, #tpu.memory_space<vmem>>, vector<8x128xf32>
    %c0_3 = arith.constant 0 : index
    %c0_4 = arith.constant 0 : index
    %2 = vector.load %arg3[%c0_3, %c0_4] : memref<144x128xbf16, #tpu.memory_space<vmem>>, vector<16x128xbf16>
    %c16 = arith.constant 16 : index
    %c0_5 = arith.constant 0 : index
    %3 = vector.load %arg3[%c16, %c0_5] : memref<144x128xbf16, #tpu.memory_space<vmem>>, vector<128x128xbf16>
    %c0_6 = arith.constant 0 : index
    %c0_7 = arith.constant 0 : index
    %4 = vector.load %arg4[%c0_6, %c0_7] : memref<128x640xbf16, #tpu.memory_space<vmem>>, vector<128x128xbf16>
    %c0_8 = arith.constant 0 : index
    %c128 = arith.constant 128 : index
    %5 = vector.load %arg4[%c0_8, %c128] : memref<128x640xbf16, #tpu.memory_space<vmem>>, vector<128x256xbf16>
    %c0_9 = arith.constant 0 : index
    %c384 = arith.constant 384 : index
    %6 = vector.load %arg4[%c0_9, %c384] : memref<128x640xbf16, #tpu.memory_space<vmem>>, vector<128x128xbf16>
    %c0_10 = arith.constant 0 : index
    %c512 = arith.constant 512 : index
    %7 = vector.load %arg4[%c0_10, %c512] : memref<128x640xbf16, #tpu.memory_space<vmem>>, vector<128x128xbf16>
    %c0_11 = arith.constant 0 : index
    %c0_12 = arith.constant 0 : index
    %8 = vector.load %arg5[%c0_11, %c0_12] : memref<8x256xf32, #tpu.memory_space<vmem>>, vector<1x128xf32>
    %c1 = arith.constant 1 : index
    %c0_13 = arith.constant 0 : index
    %9 = vector.load %arg5[%c1, %c0_13] : memref<8x256xf32, #tpu.memory_space<vmem>>, vector<1x128xf32>
    %c2 = arith.constant 2 : index
    %c0_14 = arith.constant 0 : index
    %10 = vector.load %arg5[%c2, %c0_14] : memref<8x256xf32, #tpu.memory_space<vmem>>, vector<1x256xf32>
    %c3 = arith.constant 3 : index
    %c0_15 = arith.constant 0 : index
    %11 = vector.load %arg5[%c3, %c0_15] : memref<8x256xf32, #tpu.memory_space<vmem>>, vector<1x128xf32>
    %c4 = arith.constant 4 : index
    %c0_16 = arith.constant 0 : index
    %12 = vector.load %arg5[%c4, %c0_16] : memref<8x256xf32, #tpu.memory_space<vmem>>, vector<1x128xf32>
    %c5 = arith.constant 5 : index
    %c0_17 = arith.constant 0 : index
    %13 = vector.load %arg5[%c5, %c0_17] : memref<8x256xf32, #tpu.memory_space<vmem>>, vector<1x128xf32>
    %14 = arith.truncf %0 : vector<8x16xf32> to vector<8x16xbf16>
    %cst = arith.constant dense<0.000000e+00> : vector<8x128xf32>
    %15 = tpu.matmul %14, %2, %cst {dimension_numbers = #tpu.dot_dimension_numbers<[1], [0], [0], [1], [0, 0, 1, 1], [], []>} : vector<8x16xbf16>, vector<16x128xbf16>, vector<8x128xf32> -> vector<8x128xf32>
    %16 = vector.broadcast %8 : vector<1x128xf32> to vector<8x128xf32>
    %17 = arith.addf %15, %16 : vector<8x128xf32>
    %cst_18 = arith.constant 0.000000e+00 : f32
    %18 = vector.broadcast %cst_18 : f32 to vector<8x128xf32>
    %19 = arith.maximumf %17, %18 : vector<8x128xf32>
    %20 = arith.truncf %19 : vector<8x128xf32> to vector<8x128xbf16>
    %cst_19 = arith.constant dense<0.000000e+00> : vector<8x128xf32>
    %21 = tpu.matmul %20, %4, %cst_19 {dimension_numbers = #tpu.dot_dimension_numbers<[1], [0], [0], [1], [0, 0, 1, 1], [], []>} : vector<8x128xbf16>, vector<128x128xbf16>, vector<8x128xf32> -> vector<8x128xf32>
    %22 = vector.broadcast %9 : vector<1x128xf32> to vector<8x128xf32>
    %23 = arith.addf %21, %22 : vector<8x128xf32>
    %cst_20 = arith.constant 0.000000e+00 : f32
    %24 = vector.broadcast %cst_20 : f32 to vector<8x128xf32>
    %25 = arith.maximumf %23, %24 : vector<8x128xf32>
    %26 = arith.truncf %25 : vector<8x128xf32> to vector<8x128xbf16>
    %cst_21 = arith.constant dense<0.000000e+00> : vector<8x256xf32>
    %27 = tpu.matmul %26, %5, %cst_21 {dimension_numbers = #tpu.dot_dimension_numbers<[1], [0], [0], [1], [0, 0, 1, 1], [], []>} : vector<8x128xbf16>, vector<128x256xbf16>, vector<8x256xf32> -> vector<8x256xf32>
    %28 = vector.broadcast %10 : vector<1x256xf32> to vector<8x256xf32>
    %29 = arith.addf %27, %28 : vector<8x256xf32>
    %c0_22 = arith.constant 0 : index
    %c128_23 = arith.constant 128 : index
    %30 = vector.load %arg6[%c0_22, %c128_23] : memref<8x384xf32, #tpu.memory_space<vmem>>, vector<8x256xf32>
    tpu.vector_store %arg6[%c0_22, %c128_23], %29 {strides = array<i32>} : memref<8x384xf32, #tpu.memory_space<vmem>>, vector<8x256xf32>,
    %31 = vector.extract_strided_slice %29 {offsets = [0, 0], sizes = [8, 128], strides = [1, 1]} : vector<8x256xf32> to vector<8x128xf32>
    %32 = vector.extract_strided_slice %29 {offsets = [0, 128], sizes = [8, 128], strides = [1, 1]} : vector<8x256xf32> to vector<8x128xf32>
    %cst_24 = arith.constant 5.000000e-01 : f32
    %33 = vector.broadcast %cst_24 : f32 to vector<8x128xf32>
    %34 = arith.mulf %33, %32 : vector<8x128xf32>
    %35 = math.exp %34 : vector<8x128xf32>
    %36 = arith.mulf %1, %35 : vector<8x128xf32>
    %37 = arith.addf %31, %36 : vector<8x128xf32>
    %38 = arith.truncf %37 : vector<8x128xf32> to vector<8x128xbf16>
    %cst_25 = arith.constant dense<0.000000e+00> : vector<8x128xf32>
    %39 = tpu.matmul %38, %3, %cst_25 {dimension_numbers = #tpu.dot_dimension_numbers<[1], [0], [0], [1], [0, 0, 1, 1], [], []>} : vector<8x128xbf16>, vector<128x128xbf16>, vector<8x128xf32> -> vector<8x128xf32>
    %40 = vector.broadcast %11 : vector<1x128xf32> to vector<8x128xf32>
    %41 = arith.addf %39, %40 : vector<8x128xf32>
    %cst_26 = arith.constant 0.000000e+00 : f32
    %42 = vector.broadcast %cst_26 : f32 to vector<8x128xf32>
    %43 = arith.maximumf %41, %42 : vector<8x128xf32>
    %44 = arith.truncf %43 : vector<8x128xf32> to vector<8x128xbf16>
    %cst_27 = arith.constant dense<0.000000e+00> : vector<8x128xf32>
    %45 = tpu.matmul %44, %6, %cst_27 {dimension_numbers = #tpu.dot_dimension_numbers<[1], [0], [0], [1], [0, 0, 1, 1], [], []>} : vector<8x128xbf16>, vector<128x128xbf16>, vector<8x128xf32> -> vector<8x128xf32>
    %46 = vector.broadcast %12 : vector<1x128xf32> to vector<8x128xf32>
    %47 = arith.addf %45, %46 : vector<8x128xf32>
    %cst_28 = arith.constant 0.000000e+00 : f32
    %48 = vector.broadcast %cst_28 : f32 to vector<8x128xf32>
    %49 = arith.maximumf %47, %48 : vector<8x128xf32>
    %50 = arith.truncf %49 : vector<8x128xf32> to vector<8x128xbf16>
    %cst_29 = arith.constant dense<0.000000e+00> : vector<8x128xf32>
    %51 = tpu.matmul %50, %7, %cst_29 {dimension_numbers = #tpu.dot_dimension_numbers<[1], [0], [0], [1], [0, 0, 1, 1], [], []>} : vector<8x128xbf16>, vector<128x128xbf16>, vector<8x128xf32> -> vector<8x128xf32>
    %52 = vector.broadcast %13 : vector<1x128xf32> to vector<8x128xf32>
    %53 = arith.addf %51, %52 : vector<8x128xf32>
    %c0_30 = arith.constant 0 : index
    %c0_31 = arith.constant 0 : index
    %54 = vector.load %arg6[%c0_30, %c0_31] : memref<8x384xf32, #tpu.memory_space<vmem>>, vector<8x128xf32>
    tpu.vector_store %arg6[%c0_30, %c0_31], %53 {strides = array<i32>} : memref<8x384xf32, #tpu.memory_space<vmem>>, vector<8x128xf32>,
    return
  }
  func.func @transform_0(%arg0: i32) -> (i32, i32) {
    %c0_i32 = arith.constant 0 : i32
    %c0_i32_0 = arith.constant 0 : i32
    return %arg0, %c0_i32 : i32, i32
  }
  func.func @transform_1(%arg0: i32) -> (i32, i32) {
    %c0_i32 = arith.constant 0 : i32
    %c0_i32_0 = arith.constant 0 : i32
    return %arg0, %c0_i32 : i32, i32
  }
  func.func @transform_2(%arg0: i32) -> (i32, i32) {
    %c0_i32 = arith.constant 0 : i32
    %c0_i32_0 = arith.constant 0 : i32
    %c0_i32_1 = arith.constant 0 : i32
    return %c0_i32, %c0_i32_0 : i32, i32
  }
  func.func @transform_3(%arg0: i32) -> (i32, i32) {
    %c0_i32 = arith.constant 0 : i32
    %c0_i32_0 = arith.constant 0 : i32
    %c0_i32_1 = arith.constant 0 : i32
    return %c0_i32, %c0_i32_0 : i32, i32
  }
  func.func @transform_4(%arg0: i32) -> (i32, i32) {
    %c0_i32 = arith.constant 0 : i32
    %c0_i32_0 = arith.constant 0 : i32
    %c0_i32_1 = arith.constant 0 : i32
    return %c0_i32, %c0_i32_0 : i32, i32
  }
  func.func @transform_5(%arg0: i32) -> (i32, i32) {
    %c0_i32 = arith.constant 0 : i32
    %c0_i32_0 = arith.constant 0 : i32
    return %arg0, %c0_i32 : i32, i32
  }
}

</mosaic_0001>

<bundles_post_ra>
// kernel: tpu_custom_call.1
= control target key start
LH: loop header
LB: loop body
LE: loop exit
PB: predicated region body
PF: predicated region fallthrough
CT: control target
= control target key end

     0   :  { %10 = vsyncpa [#allocation3], 0  ;;  %s1302_s0 = inlined_call_operand.hbm [shape: f32[8,16], index: 0, kind: input, shape index: {}]   ;;  %s1303_s1 = inlined_call_operand.hbm [shape: f32[8,128], index: 1, kind: input, shape index: {}]   ;;  %s1304_s2 = inlined_call_operand.hbm [shape: bf16[144,128], index: 2, kind: input, shape index: {}]   ;;  %s1305_s3 = inlined_call_operand.hbm [shape: bf16[128,640], index: 3, kind: input, shape index: {}]   ;;  %s1306_s4 = inlined_call_operand.hbm [shape: f32[8,256], index: 4, kind: input, shape index: {}]   ;;  %s1307_s5 = inlined_call_operand.hbm [shape: f32[8,384], index: 5, kind: output, shape index: {}]  }
   0x1   :  { %11 = vsyncpa [#allocation6], 0 }
   0x2   :  { %12 = vsyncpa [#allocation9], 0 }
   0x3   :  { %13 = vsyncpa [#allocation4], 0  ;;  %s1130_s18 = smov [#allocation5]   ;;  %s1131_s20 = smov [#allocation8]  }
   0x4   :  { %s30_s19 = sshll.u32 %s1130_s18, 4  ;;  %s51_s21 = sshll.u32 %s1131_s20, 4  ;;  %s31_s19 = int_to_ptr.vmem [resolvable:$true] %s30_s19  ;;  %s1173_s21 = int_to_ptr.vmem [resolvable:$true] %s51_s21 }
   0x5   :  { %s990_s24 = scalar_lea.hbm %s1303_s1, 128 }
   0x6   :  { %p991_p0 = scmp.ne.s32.totalorder %s1303_s1, %s990_s24  ;;  %p994_p1 = scmp.lt.u32.totalorder %s990_s24, %s1303_s1 }
   0x8   :  { %p996_p2 = pnand %p994_p1, %p991_p0 }
   0xa   :  { %999 = shalt.err (!%p996_p2)
}
   0xb   :  { %s1000_s29 = scalar_lea.vmem %s31_s19, 128  ;;  %p1005_p4 = scmp.lt.s32.totalorder %s31_s19, %s31_s19 }
   0xc   :  { %p1001_p3 = scmp.ne.s32.totalorder %s31_s19, %s1000_s29  ;;  %p1006_p5 = scmp.lt.s32.totalorder %s1000_s29, %s1000_s29 }
   0xe   :  { %p1007_p6 = por %p1006_p5, %p1005_p4 }
  0x10   :  { %p1008_p7 = pnand %p1007_p6, %p1001_p3 }
  0x12   :  { %1011 = shalt.err (!%p1008_p7)
}
  0x13   :  { %33 = dma.hbm_to_vmem [thread:$0]  %s1303_s1, 128, %s31_s19, [#allocation6]  }
  0x14   :  { %s1012_s9 = scalar_lea.hbm %s1305_s3, 5120 }
  0x15   :  { %p1013_p8 = scmp.ne.s32.totalorder %s1305_s3, %s1012_s9  ;;  %p1016_p9 = scmp.lt.u32.totalorder %s1012_s9, %s1305_s3 }
  0x17   :  { %p1018_p10 = pnand %p1016_p9, %p1013_p8 }
  0x19   :  { %1021 = shalt.err (!%p1018_p10)
}
  0x1a   :  { %s1022_s14 = scalar_lea.vmem %s1173_s21, 5120  ;;  %p1027_p12 = scmp.lt.s32.totalorder %s1173_s21, %s1173_s21 }
  0x1b   :  { %p1023_p11 = scmp.ne.s32.totalorder %s1173_s21, %s1022_s14  ;;  %p1028_p13 = scmp.lt.s32.totalorder %s1022_s14, %s1022_s14 }
  0x1d   :  { %p1029_p0 = por %p1028_p13, %p1027_p12 }
  0x1f   :  { %p1030_p1 = pnand %p1029_p0, %p1023_p11 }
  0x21   :  { %1033 = shalt.err (!%p1030_p1)
}
  0x22   :  { %s1132_s1 = smov 320   ;;  %s1133_s15 = smov 20  }
  0x23   :  { %57 = dma.hbm_to_vmem [thread:$0]  %s1305_s3, 5120, %s1173_s21, [#allocation9], %s1132_s1, %s1132_s1, %s1133_s15  }
  0x24   :  { %s1134_s18 = smov [#allocation2]   ;;  %s1135_s20 = smov [#allocation7]  }
  0x25   :  { %s20_s19 = sshll.u32 %s1134_s18, 4  ;;  %s39_s22 = sshll.u32 %s1135_s20, 4  ;;  %s21_s19 = int_to_ptr.vmem [resolvable:$true] %s20_s19  ;;  %s1204_s22 = int_to_ptr.vmem [resolvable:$true] %s39_s22 }
  0x26   :  { %s1034_s25 = scalar_lea.hbm %s1302_s0, 128 }
  0x27   :  { %p1035_p2 = scmp.ne.s32.totalorder %s1302_s0, %s1034_s25  ;;  %p1038_p3 = scmp.lt.u32.totalorder %s1034_s25, %s1302_s0 }
  0x29   :  { %p1040_p4 = pnand %p1038_p3, %p1035_p2 }
  0x2b   :  { %1043 = shalt.err (!%p1040_p4)
}
  0x2c   :  { %s1044_s3 = scalar_lea.vmem %s21_s19, 128  ;;  %p1049_p6 = scmp.lt.s32.totalorder %s21_s19, %s21_s19 }
  0x2d   :  { %p1045_p5 = scmp.ne.s32.totalorder %s21_s19, %s1044_s3  ;;  %p1050_p7 = scmp.lt.s32.totalorder %s1044_s3, %s1044_s3 }
  0x2f   :  { %p1051_p8 = por %p1050_p7, %p1049_p6 }
  0x31   :  { %p1052_p9 = pnand %p1051_p8, %p1045_p5 }
  0x33   :  { %1055 = shalt.err (!%p1052_p9)
}
  0x34   :  { %23 = dma.hbm_to_vmem [thread:$0]  %s1302_s0, 128, %s21_s19, [#allocation3]  }
  0x35   :  { %s1056_s8 = scalar_lea.hbm %s1304_s2, 1152 }
  0x36   :  { %p1057_p10 = scmp.ne.s32.totalorder %s1304_s2, %s1056_s8  ;;  %p1060_p11 = scmp.lt.u32.totalorder %s1056_s8, %s1304_s2 }
  0x38   :  { %p1062_p12 = pnand %p1060_p11, %p1057_p10 }
  0x3a   :  { %1065 = shalt.err (!%p1062_p12)
}
  0x3b   :  { %s1066_s13 = scalar_lea.vmem %s1204_s22, 1152  ;;  %p1071_p0 = scmp.lt.s32.totalorder %s1204_s22, %s1204_s22 }
  0x3c   :  { %p1067_p13 = scmp.ne.s32.totalorder %s1204_s22, %s1066_s13  ;;  %p1072_p1 = scmp.lt.s32.totalorder %s1066_s13, %s1066_s13 }
  0x3e   :  { %p1073_p2 = por %p1072_p1, %p1071_p0 }
  0x40   :  { %p1074_p3 = pnand %p1073_p2, %p1067_p13 }
  0x42   :  { %1077 = shalt.err (!%p1074_p3)
}
  0x43   :  { %s1136_s0 = smov 64   ;;  %s1137_s14 = smov 4  }
  0x44   :  { %45 = dma.hbm_to_vmem [thread:$0]  %s1304_s2, 1152, %s1204_s22, [#allocation6], %s1136_s0, %s1136_s0, %s1137_s14  }
  0x45   :  { %s1138_s16 = smov [#allocation10]   ;;  %s1078_s20 = scalar_lea.hbm %s1306_s4, 256 }
  0x46   :  { %s64_s17 = sshll.u32 %s1138_s16, 4  ;;  %p1079_p4 = scmp.ne.s32.totalorder %s1306_s4, %s1078_s20  ;;  %s65_s17 = int_to_ptr.vmem [resolvable:$true] %s64_s17 }
  0x47   :  { %p1082_p5 = scmp.lt.u32.totalorder %s1078_s20, %s1306_s4 }
  0x49   :  { %p1084_p6 = pnand %p1082_p5, %p1079_p4 }
  0x4b   :  { %1087 = shalt.err (!%p1084_p6)
}
  0x4c   :  { %s1088_s27 = scalar_lea.vmem %s65_s17, 256  ;;  %p1093_p8 = scmp.lt.s32.totalorder %s65_s17, %s65_s17 }
  0x4d   :  { %p1089_p7 = scmp.ne.s32.totalorder %s65_s17, %s1088_s27  ;;  %p1094_p9 = scmp.lt.s32.totalorder %s1088_s27, %s1088_s27 }
  0x4f   :  { %p1095_p10 = por %p1094_p9, %p1093_p8 }
  0x51   :  { %p1096_p11 = pnand %p1095_p10, %p1089_p7 }
  0x53   :  { %1099 = shalt.err (!%p1096_p11)
}
  0x54   :  { %67 = dma.hbm_to_vmem [thread:$0]  %s1306_s4, 256, %s65_s17, [#allocation9]  }
  0x55   :  { %1122 = dma.done.wait [#allocation3], 128  }
  0x56   :  { %1123 = vsyncadd [#allocation3], 4294967168 }
  0x57   :  { %1124 = dma.done.wait [#allocation6], 1280  }
  0x58   :  { %1125 = vsyncadd [#allocation6], 4294966016 }
  0x59   :  { %1126 = dma.done.wait [#allocation9], 5376  }
  0x5a   :  { %1127 = vsyncadd [#allocation9], 4294961920  ;;  %v1139_v0 = vmov 0.0   ;;  %vm1140_vm0 = vmmov 0   ;;  %v931_v1 = vld [vmem:[#allocation7] sm:$0xff]   ;;  %v84_v2 = vld [vmem:[#allocation2] sm:$0xff]  ;;  %v319_v59 = vlaneseq }
  0x5b   :  { %832 = vmatprep.subr.bf16.mxu0 %v1139_v0  ;;  %834 = vmatprep.mubr.msk.bf16.mxu0 %vm1140_vm0, %v1139_v0  ;;  %vm182_vm1 = vcmask 130048   ;;  %v175_v3 = vpack.c.bf16 %v84_v2, %v84_v2  ;;  %v932_v4 = vld [vmem:[#allocation8] ss:$20 sps:$4 sm:$0xff]   ;;  %v933_v5 = vld [vmem:[#allocation8 + $0x28] ss:$20 sps:$4 sm:$0xff]   ;;  %v1141_v36 = vmov 0  }
  0x5c   :  { %838 = vmatprep.subr.bf16.mxu1 %v1139_v0  ;;  %854 = vmatprep.mubr.msk.bf16.mxu1 %vm1140_vm0, %v1139_v0  ;;  %v934_v6 = vld [vmem:[#allocation8 + $0x50] ss:$20 sps:$4 sm:$0xff]   ;;  %v935_v7 = vld [vmem:[#allocation8 + $0x78] ss:$20 sps:$4 sm:$0xff]   ;;  %v936_v8 = vld [vmem:[#allocation8 + $0xa0] ss:$20 sps:$4 sm:$0xff]  }
  0x5d   :  { %833 = vmatpush3.bf16.msra.mxu0 %v931_v1  ;;  %839 = vmatpush3.bf16.msra.mxu1 %v932_v4  ;;  %v937_v9 = vld [vmem:[#allocation8 + $0xc8] ss:$20 sps:$4 sm:$0xff]   ;;  %v938_v10 = vld [vmem:[#allocation8 + $0xf0] ss:$20 sps:$4 sm:$0xff]   ;;  %v939_v11 = vld [vmem:[#allocation8 + $0x118] ss:$20 sps:$4 sm:$0xff]  }
  0x5e   :  { %840 = vmatprep.subr.bf16.mxu1 %v1139_v0  ;;  %v940_v12 = vld [vmem:[#allocation8 + $0x4] ss:$20 sps:$4 sm:$0xff]   ;;  %v942_v13 = vld [vmem:[#allocation8 + $0x8] ss:$20 sps:$4 sm:$0xff]   ;;  %v943_v15 = vld [vmem:[#allocation8 + $0x2c] ss:$20 sps:$4 sm:$0xff]  }
  0x5f   :  { %v945_v14 = vld [vmem:[#allocation8 + $0x30] ss:$20 sps:$4 sm:$0xff]   ;;  %409 = vmatprep.subr.bf16.mxu0 %v942_v13  ;;  %v948_v16 = vld [vmem:[#allocation8 + $0x58] ss:$20 sps:$4 sm:$0xff]   ;;  %v946_v17 = vld [vmem:[#allocation8 + $0x54] ss:$20 sps:$4 sm:$0xff]  }
  0x60   :  { %835 = vmatmul.mubr.msk.bf16.vlgmr.msra.gmra.mrb[0].mxu0 %vm182_vm1, %v175_v3  ;;  %v951_v18 = vld [vmem:[#allocation8 + $0x80] ss:$20 sps:$4 sm:$0xff]   ;;  %v949_v19 = vld [vmem:[#allocation8 + $0x7c] ss:$20 sps:$4 sm:$0xff]   ;;  %v952_v21 = vld [vmem:[#allocation8 + $0xa4] ss:$20 sps:$4 sm:$0xff]  }
  0x61   :  { %841 = vmatpush3.bf16.msra.mxu1 %v933_v5  ;;  %410 = vmatpush1.bf16.msra.mxu0 %v940_v12  ;;  %v954_v20 = vld [vmem:[#allocation8 + $0xa8] ss:$20 sps:$4 sm:$0xff]   ;;  %v957_v22 = vld [vmem:[#allocation8 + $0xd0] ss:$20 sps:$4 sm:$0xff]   ;;  %v955_v23 = vld [vmem:[#allocation8 + $0xcc] ss:$20 sps:$4 sm:$0xff]  }
  0x62   :  { %842 = vmatprep.subr.bf16.mxu1 %v1139_v0  ;;  %411 = vmatprep.subr.bf16.mxu0 %v945_v14  ;;  %v960_v24 = vld [vmem:[#allocation8 + $0xf8] ss:$20 sps:$4 sm:$0xff]   ;;  %v958_v25 = vld [vmem:[#allocation8 + $0xf4] ss:$20 sps:$4 sm:$0xff]   ;;  %v168_v26 = vld [vmem:[#allocation10] ss:$0 sm:$0xff] }
  0x63   :  { %v963_v34 = vld [vmem:[#allocation8 + $0x120] ss:$20 sps:$4 sm:$0xff]   ;;  %v961_v35 = vld [vmem:[#allocation8 + $0x11c] ss:$20 sps:$4 sm:$0xff]   ;;  %441 = vmatprep.mubr.bf16.mxu0 %v1141_v36  ;;  %v965_v38 = vld [vmem:[#allocation7 + $0x10] sm:$0xff]   ;;  %v320_v60 = vshrl.u32 %v319_v59, 7 }
  0x64   :  { %v964_v37 = vld [vmem:[#allocation7 + $0x8] sm:$0xff]   ;;  %v966_v47 = vld [vmem:[#allocation7 + $0x18] sm:$0xff]   ;;  %v967_v48 = vld [vmem:[#allocation7 + $0x20] sm:$0xff]   ;;  %s1142_s4 = smov [#allocation11]  }
  0x65   :  { %843 = vmatpush3.bf16.msra.mxu1 %v934_v6  ;;  %412 = vmatpush1.bf16.msra.mxu0 %v943_v15  ;;  %v169_v39 = vld [vmem:[#allocation10 + $0x1] ss:$0 sm:$0xff]  ;;  %v969_v50 = vld [vmem:[#allocation7 + $0x30] sm:$0xff]   ;;  %v970_v51 = vld [vmem:[#allocation7 + $0x38] sm:$0xff]   ;;  %v321_v61 = vsub.s32 0, %v320_v60  ;;  %v325_v63 = vsub.s32 1, %v320_v60 }
  0x66   :  { %844 = vmatprep.subr.bf16.mxu1 %v1139_v0  ;;  %413 = vmatprep.subr.bf16.mxu0 %v948_v16  ;;  %v968_v49 = vld [vmem:[#allocation7 + $0x28] sm:$0xff]   ;;  %v971_v52 = vld [vmem:[#allocation7 + $0x40] sm:$0xff]   ;;  %v973_v54 = vld [vmem:[#allocation8 + $0x34] ss:$20 sps:$4 sm:$0xff]   ;;  %s733_s28 = sshll.u32 %s1142_s4, 4  ;;  %s734_s28 = int_to_ptr.vmem [resolvable:$true] %s733_s28 }
  0x67   :  { %v972_v53 = vld [vmem:[#allocation8 + $0xc] ss:$20 sps:$4 sm:$0xff]   ;;  %v974_v55 = vld [vmem:[#allocation8 + $0x5c] ss:$20 sps:$4 sm:$0xff]   ;;  %v975_v56 = vld [vmem:[#allocation8 + $0x84] ss:$20 sps:$4 sm:$0xff]   ;;  %p1105_p13 = scmp.lt.s32.totalorder %s734_s28, %s734_s28 }
  0x68   :  { %v976_v57 = vld [vmem:[#allocation8 + $0xac] ss:$20 sps:$4 sm:$0xff]   ;;  %v977_v58 = vld [vmem:[#allocation8 + $0xd4] ss:$20 sps:$4 sm:$0xff]   ;;  %v978_v16 = vld [vmem:[#allocation8 + $0xfc] ss:$20 sps:$4 sm:$0xff]  }
  0x69   :  { %845 = vmatpush3.bf16.msra.mxu1 %v935_v7  ;;  %414 = vmatpush1.bf16.msra.mxu0 %v946_v17  ;;  %v171_v62 = vld [vmem:[#allocation10 + $0x2] ss:$8 sm:$0x3]  ;;  %v979_v17 = vld [vmem:[#allocation8 + $0x124] ss:$20 sps:$4 sm:$0xff]   ;;  %s1100_s29 = scalar_lea.vmem %s734_s28, 384 }
  0x6a   :  { %846 = vmatprep.subr.bf16.mxu1 %v1139_v0  ;;  %415 = vmatprep.subr.bf16.mxu0 %v951_v18  ;;  %v322_v1 = vrot.slane %v171_v62, %v321_v61  ;;  %v326_v2 = vrot.slane %v171_v62, %v325_v63  ;;  %v980_v18 = vld [vmem:[#allocation8 + $0x10] ss:$20 sps:$4 sm:$0xff]   ;;  %p1101_p12 = scmp.ne.s32.totalorder %s734_s28, %s1100_s29  ;;  %p1106_p0 = scmp.lt.s32.totalorder %s1100_s29, %s1100_s29 }
  0x6c   :  { %p1107_p1 = por %p1106_p0, %p1105_p13 }
  0x6d   :  { %847 = vmatpush3.bf16.msra.mxu1 %v936_v8  ;;  %416 = vmatpush1.bf16.msra.mxu0 %v949_v19  ;;  %v981_v19 = vld [vmem:[#allocation8 + $0x38] ss:$20 sps:$4 sm:$0xff]  }
  0x6e   :  { %848 = vmatprep.subr.bf16.mxu1 %v1139_v0  ;;  %417 = vmatprep.subr.bf16.mxu0 %v954_v20  ;;  %v982_v20 = vld [vmem:[#allocation8 + $0x60] ss:$20 sps:$4 sm:$0xff]   ;;  %p1108_p2 = pnand %p1107_p1, %p1101_p12 }
  0x71   :  { %849 = vmatpush3.bf16.msra.mxu1 %v937_v9  ;;  %418 = vmatpush1.bf16.msra.mxu0 %v952_v21  ;;  %v983_v21 = vld [vmem:[#allocation8 + $0x88] ss:$20 sps:$4 sm:$0xff]  }
  0x72   :  { %850 = vmatprep.subr.bf16.mxu1 %v1139_v0  ;;  %419 = vmatprep.subr.bf16.mxu0 %v957_v22  ;;  %v984_v22 = vld [vmem:[#allocation8 + $0xb0] ss:$20 sps:$4 sm:$0xff]  }
  0x75   :  { %851 = vmatpush3.bf16.msra.mxu1 %v938_v10  ;;  %420 = vmatpush1.bf16.msra.mxu0 %v955_v23  ;;  %v985_v23 = vld [vmem:[#allocation8 + $0xd8] ss:$20 sps:$4 sm:$0xff]  }
  0x76   :  { %852 = vmatprep.subr.bf16.mxu1 %v1139_v0  ;;  %421 = vmatprep.subr.bf16.mxu0 %v960_v24  ;;  %v172_v24 = vld [vmem:[#allocation10 + $0x3] ss:$0 sm:$0xff] }
  0x79   :  { %853 = vmatpush3.bf16.msra.mxu1 %v939_v11  ;;  %422 = vmatpush1.bf16.msra.mxu0 %v958_v25  ;;  %v85_v11 = vld [vmem:[#allocation5] sm:$0xff] }
  0x7a   :  { %858 = vmatprep.subr.bf16.mxu1 %v1139_v0  ;;  %423 = vmatprep.subr.bf16.mxu0 %v963_v34  ;;  %v173_v34 = vld [vmem:[#allocation10 + $0x4] ss:$0 sm:$0xff] }
  0x7d   :  { %424 = vmatpush1.bf16.msra.mxu0 %v961_v35 }
  0x7e   :  { %878 = vmatprep.subr.bf16.mxu0 %v1139_v0 }
 0x133   :  { %v220_v27 = vpop.f32.mrb[0].mxu0 }
 0x134   :  { %v221_v28 = vadd.f32 %v220_v27, %v168_v26  ;;  %v836_v29 = vpop.f32.mrb[1].mxu0 }
 0x135   :  { %v223_v30 = vpop.f32.mrb[2].mxu0 }
 0x136   :  { %v226_v31 = vmax.f32 %v221_v28, 0.0  ;;  %v837_v32 = vpop.f32.mrb[3].mxu0 }
 0x137   :  { %v986_v32 = vld [vmem:[#allocation8 + $0x100] ss:$20 sps:$4 sm:$0xff]  }
 0x138   :  { %v227_v33 = vpack.c.bf16 %v226_v31, %v226_v31 }
 0x13a   :  { %855 = vmatmul.mubr.bf16.vlgmr.msra.gmra.mrb[0].mxu1 %v227_v33  ;;  %v987_v33 = vld [vmem:[#allocation8 + $0x128] ss:$20 sps:$4 sm:$0xff]  }
 0x13b   :  { %874 = vmatprep.mubr.msk.bf16.mxu1 %vm1140_vm0, %v1139_v0  ;;  %859 = vmatpush3.bf16.msra.mxu1 %v964_v37 }
 0x13c   :  { %860 = vmatprep.subr.bf16.mxu1 %v1139_v0 }
 0x13f   :  { %861 = vmatpush3.bf16.msra.mxu1 %v965_v38 }
 0x140   :  { %862 = vmatprep.subr.bf16.mxu1 %v1139_v0 }
 0x143   :  { %863 = vmatpush3.bf16.msra.mxu1 %v966_v47 }
 0x144   :  { %864 = vmatprep.subr.bf16.mxu1 %v1139_v0 }
 0x147   :  { %865 = vmatpush3.bf16.msra.mxu1 %v967_v48 }
 0x148   :  { %866 = vmatprep.subr.bf16.mxu1 %v1139_v0 }
 0x14b   :  { %867 = vmatpush3.bf16.msra.mxu1 %v968_v49 }
 0x14c   :  { %868 = vmatprep.subr.bf16.mxu1 %v1139_v0 }
 0x14f   :  { %869 = vmatpush3.bf16.msra.mxu1 %v969_v50 }
 0x150   :  { %870 = vmatprep.subr.bf16.mxu1 %v1139_v0 }
 0x153   :  { %871 = vmatpush3.bf16.msra.mxu1 %v970_v51 }
 0x154   :  { %872 = vmatprep.subr.bf16.mxu1 %v1139_v0 }
 0x157   :  { %873 = vmatpush3.bf16.msra.mxu1 %v971_v52 }
 0x158   :  { %898 = vmatprep.subr.bf16.mxu1 %v1139_v0 }
 0x20d   :  { %v310_v40 = vpop.f32.mrb[0].mxu1 }
 0x20e   :  { %v311_v41 = vadd.f32 %v310_v40, %v169_v39  ;;  %v856_v42 = vpop.f32.mrb[1].mxu1 }
 0x20f   :  { %v313_v43 = vpop.f32.mrb[2].mxu1  ;;  %v174_v42 = vld [vmem:[#allocation10 + $0x5] ss:$0 sm:$0xff] }
 0x210   :  { %v316_v44 = vmax.f32 %v311_v41, 0.0  ;;  %v857_v45 = vpop.f32.mrb[3].mxu1 }
 0x212   :  { %v317_v46 = vpack.c.bf16 %v316_v44, %v316_v44 }
 0x214   :  { %442 = vmatmul.mubr.bf16.vlgmr.msra.gmra.mrb[4].mxu0 %v317_v46 }
 0x215   :  { %894 = vmatprep.mubr.msk.bf16.mxu0 %vm1140_vm0, %v1139_v0  ;;  %879 = vmatpush3.bf16.msra.mxu0 %v972_v53 }
 0x216   :  { %880 = vmatprep.subr.bf16.mxu0 %v1139_v0 }
 0x219   :  { %881 = vmatpush3.bf16.msra.mxu0 %v973_v54 }
 0x21a   :  { %882 = vmatprep.subr.bf16.mxu0 %v1139_v0 }
 0x21d   :  { %883 = vmatpush3.bf16.msra.mxu0 %v974_v55 }
 0x21e   :  { %884 = vmatprep.subr.bf16.mxu0 %v1139_v0 }
 0x221   :  { %885 = vmatpush3.bf16.msra.mxu0 %v975_v56 }
 0x222   :  { %886 = vmatprep.subr.bf16.mxu0 %v1139_v0 }
 0x225   :  { %887 = vmatpush3.bf16.msra.mxu0 %v976_v57 }
 0x226   :  { %888 = vmatprep.subr.bf16.mxu0 %v1139_v0 }
 0x229   :  { %889 = vmatpush3.bf16.msra.mxu0 %v977_v58 }
 0x22a   :  { %890 = vmatprep.subr.bf16.mxu0 %v1139_v0 }
 0x22d   :  { %891 = vmatpush3.bf16.msra.mxu0 %v978_v16 }
 0x22e   :  { %892 = vmatprep.subr.bf16.mxu0 %v1139_v0 }
 0x231   :  { %893 = vmatpush3.bf16.msra.mxu0 %v979_v17 }
 0x2e7   :  { %v443_v3 = vpop.f32.mrb[4].mxu0 }
 0x2e8   :  { %v444_v4 = vadd.f32 %v443_v3, %v322_v1  ;;  %v445_v5 = vpop.f32.mrb[5].mxu0 }
 0x2e9   :  { %v446_v6 = vadd.f32 %v445_v5, %v326_v2  ;;  %v447_v7 = vpop.f32.mrb[6].mxu0 }
 0x2ea   :  { %450 = vst [vmem:[#allocation11 + $0x8] sm:$0xff] %v444_v4  ;;  %v448_v8 = vpop.f32.mrb[7].mxu0 }
 0x2eb   :  { %451 = vst [vmem:[#allocation11 + $0x10] sm:$0xff] %v446_v6  ;;  %v452_v9 = vmul.f32 0.5, %v446_v6 }
 0x2ed   :  { %v453_v10 = vmul.f32 1.442695, %v452_v9 }
 0x2ef   :  { %988 = vpow2.f32 %v453_v10 }
 0x2f9   :  { %v989_v12 = vpop.eup %988 }
 0x2fa   :  { %v455_v13 = vmul.f32 %v989_v12, %v85_v11 }
 0x2fc   :  { %v456_v14 = vadd.f32 %v455_v13, %v444_v4 }
 0x2fe   :  { %v457_v15 = vpack.c.bf16 %v456_v14, %v456_v14 }
 0x300   :  { %875 = vmatmul.mubr.bf16.vlgmr.msra.gmra.mrb[4].mxu1 %v457_v15 }
 0x301   :  { %914 = vmatprep.mubr.msk.bf16.mxu1 %vm1140_vm0, %v1139_v0  ;;  %899 = vmatpush3.bf16.msra.mxu1 %v980_v18 }
 0x302   :  { %900 = vmatprep.subr.bf16.mxu1 %v1139_v0 }
 0x305   :  { %901 = vmatpush3.bf16.msra.mxu1 %v981_v19 }
 0x306   :  { %902 = vmatprep.subr.bf16.mxu1 %v1139_v0 }
 0x309   :  { %903 = vmatpush3.bf16.msra.mxu1 %v982_v20 }
 0x30a   :  { %904 = vmatprep.subr.bf16.mxu1 %v1139_v0 }
 0x30d   :  { %905 = vmatpush3.bf16.msra.mxu1 %v983_v21 }
 0x30e   :  { %906 = vmatprep.subr.bf16.mxu1 %v1139_v0 }
 0x311   :  { %907 = vmatpush3.bf16.msra.mxu1 %v984_v22 }
 0x312   :  { %908 = vmatprep.subr.bf16.mxu1 %v1139_v0 }
 0x315   :  { %909 = vmatpush3.bf16.msra.mxu1 %v985_v23 }
 0x316   :  { %910 = vmatprep.subr.bf16.mxu1 %v1139_v0 }
 0x319   :  { %911 = vmatpush3.bf16.msra.mxu1 %v986_v32 }
 0x31a   :  { %912 = vmatprep.subr.bf16.mxu1 %v1139_v0 }
 0x31d   :  { %913 = vmatpush3.bf16.msra.mxu1 %v987_v33 }
 0x3d3   :  { %v540_v25 = vpop.f32.mrb[4].mxu1 }
 0x3d4   :  { %v541_v26 = vadd.f32 %v540_v25, %v172_v24  ;;  %v876_v27 = vpop.f32.mrb[5].mxu1 }
 0x3d5   :  { %v543_v28 = vpop.f32.mrb[6].mxu1 }
 0x3d6   :  { %v546_v29 = vmax.f32 %v541_v26, 0.0  ;;  %v877_v30 = vpop.f32.mrb[7].mxu1 }
 0x3d8   :  { %v547_v31 = vpack.c.bf16 %v546_v29, %v546_v29 }
 0x3da   :  { %895 = vmatmul.mubr.bf16.vlgmr.msra.gmra.mrb[8].mxu0 %v547_v31 }
 0x4ad   :  { %v630_v35 = vpop.f32.mrb[8].mxu0 }
 0x4ae   :  { %v631_v36 = vadd.f32 %v630_v35, %v173_v34  ;;  %v896_v37 = vpop.f32.mrb[9].mxu0 }
 0x4af   :  { %v633_v38 = vpop.f32.mrb[10].mxu0 }
 0x4b0   :  { %v636_v39 = vmax.f32 %v631_v36, 0.0  ;;  %v897_v40 = vpop.f32.mrb[11].mxu0 }
 0x4b2   :  { %v637_v41 = vpack.c.bf16 %v636_v39, %v636_v39 }
 0x4b4   :  { %915 = vmatmul.mubr.bf16.vlgmr.msra.gmra.mrb[8].mxu1 %v637_v41 }
 0x587   :  { %v720_v43 = vpop.f32.mrb[8].mxu1 }
 0x588   :  { %v721_v44 = vadd.f32 %v720_v43, %v174_v42  ;;  %v916_v45 = vpop.f32.mrb[9].mxu1 }
 0x589   :  { %v723_v46 = vpop.f32.mrb[10].mxu1 }
 0x58a   :  { %726 = vst [vmem:[#allocation11] sm:$0xff] %v721_v44  ;;  %v917_v0 = vpop.f32.mrb[11].mxu1 }
 0x58b   :  { %1111 = shalt.err (!%p1108_p2)
}
 0x58c   :  { %s1112_s30 = scalar_lea.hbm %s1307_s5, 384 }
 0x58d   :  { %p1113_p3 = scmp.ne.s32.totalorder %s1307_s5, %s1112_s30  ;;  %p1116_p4 = scmp.lt.u32.totalorder %s1112_s30, %s1307_s5 }
 0x58f   :  { %p1118_p5 = pnand %p1116_p4, %p1113_p3 }
 0x591   :  { %1121 = shalt.err (!%p1118_p5)
}
 0x592   :  { %736 = dma.vmem_to_hbm [thread:$0]  %s734_s28, 384, %s1307_s5, [#allocation4]  }
 0x593   :  { %1128 = dma.done.wait [#allocation4], 384  }
 0x594   :  { %1129 = vsyncadd [#allocation4], 4294966912 }
 0x595   :  { %740 = vsyncpa [#allocation3], 1 }
 0x596   :  { %741 = vsyncpa [#allocation6], 1 }
 0x597   :  { %742 = vsyncpa [#allocation9], 1 }
 0x598   :  { %743 = vsyncpa [#allocation4], 1 }

</bundles_post_ra>
